<compile_context>
chip_gen: v7x
topology: tpu7x:2x2x1
jax: 0.10.0
libtpu: 0.0.40
codegen_flags: <defaults>
</compile_context>

<pallas_src>
import functools

import jax
import jax.numpy as jnp
from jax.experimental import pallas as pl
from jax.experimental.pallas import tpu as pltpu


_REDUCE_CHUNK = 1024  # lanes upcast to f32 at a time during the spatial mean


def _vmem_budget_bytes():
    """~75% of this generation's per-core VMEM (96 MiB v5e/v6e, 48 MiB v7x)."""
    cap = 128 * 1024 * 1024
    try:
        info = pltpu.get_tpu_info()
        cap = int(getattr(info, "vmem_capacity_bytes", cap))
    except Exception:
        pass
    return (3 * cap) // 4


def _lane_sum_f32(x_ref, width, valid_len, chunk=_REDUCE_CHUNK):
    """Sum x_ref[0, :, :width] over the lane axis in f32, zeroing lanes >= valid_len.

    `width` is the static lane extent of the block; `valid_len` may be traced
    (partial boundary tiles) or a static int equal to `width` (no masking).
    Only `chunk` lanes are ever upcast to f32 at once (bounds VMEM pressure).
    Returns a (C, 1) float32 column of sums.
    """
    C = x_ref.shape[1]
    static_full = isinstance(valid_len, int) and valid_len >= width

    def chunk_sum(off, size):
        blk = x_ref[0, :, pl.ds(off, size)].astype(jnp.float32)      # (C, size)
        if not static_full:
            lane = jax.lax.broadcasted_iota(jnp.int32, blk.shape, 1)
            blk = jnp.where(off + lane < valid_len, blk, 0.0)
        return jnp.sum(blk, axis=1, keepdims=True)                    # (C, 1)

    if width <= chunk:
        return chunk_sum(0, width)

    n_full = width // chunk
    rem = width - n_full * chunk

    def body(i, acc):
        off = pl.multiple_of(i * chunk, chunk)
        return acc + chunk_sum(off, chunk)

    acc = jax.lax.fori_loop(0, n_full, body, jnp.zeros((C, 1), jnp.float32),
                            unroll=(n_full <= 8))
    if rem > 0:
        acc = acc + chunk_sum(n_full * chunk, rem)
    return acc


def _se_gate(mean, w1_ref, b1_ref, w2_ref, b2_ref):
    """gate = sigmoid(W2 @ relu(W1 @ mean + b1) + b2), all on the VPU."""
    # FC1 ("conv_squeeze"): h[s] = sum_c mean[c] * w1[c, s] + b1[s]
    h = jnp.sum(mean * w1_ref[...], axis=0, keepdims=True) + b1_ref[...]   # (1, S)
    h = jnp.maximum(h, 0.0)                                                # ReLU
    # FC2 ("conv_excite"): g[c] = sum_s h[s] * w2t[c, s] + b2[c]
    g = jnp.sum(w2_ref[...] * h, axis=1, keepdims=True) + b2_ref[...]      # (C, 1)
    return jax.nn.sigmoid(g)                                               # (C, 1) f32


def _se_fused_kernel(x_ref, w1_ref, b1_ref, w2_ref, b2_ref, o_ref, *, hw):
    # x_ref block: (1, C, HW) — channels on sublanes, spatial on lanes.
    mean = _lane_sum_f32(x_ref, width=hw, valid_len=hw) * (1.0 / hw)       # (C, 1) f32
    gate = _se_gate(mean, w1_ref, b1_ref, w2_ref, b2_ref)                  # (C, 1) f32
    x = x_ref[0]                                                           # (C, HW)
    # NOTE: on v5e (no bf16 VALU) an f32-gate multiply would be equivalent;
    # on v6e/v7x the native-dtype multiply is the cheaper path.
    o_ref[0] = (x * gate.astype(x.dtype)).astype(o_ref.dtype)


def _se_reduce_kernel(x_ref, sum_ref, *, hw, tile):
    """Accumulate per-batch, per-channel spatial sums across HW tiles."""
    t = pl.program_id(1)

    @pl.when(t == 0)
    def _():
        sum_ref[...] = jnp.zeros_like(sum_ref)

    valid = hw - t * tile                                 # lanes of this tile in-bounds
    part = _lane_sum_f32(x_ref, width=tile, valid_len=valid)   # (C, 1) f32
    sum_ref[...] += part[None, :, :]


def _se_scale_kernel(sum_ref, x_ref, w1_ref, b1_ref, w2_ref, b2_ref, o_ref, *, inv_hw):
    """Streaming excite/scale pass; recomputes the tiny gate per tile (cheap)."""
    mean = sum_ref[0] * inv_hw                                             # (C, 1) f32
    gate = _se_gate(mean, w1_ref, b1_ref, w2_ref, b2_ref)                  # (C, 1) f32
    x = x_ref[0]                                                           # (C, T)
    o_ref[0] = (x * gate.astype(x.dtype)).astype(o_ref.dtype)


def squeeze_and_excite(x_nchw, w1, b1, w2t, b2, *, donate_input=False,
                       _force_path=None, _force_tile=None):
    """SE forward pass (matches the PyTorch module).

    x_nchw : [B, C, H, W]
    w1     : [C, S]   (= PyTorch conv_squeeze.weight[:, :, 0, 0].T)
    b1     : [1, S]   (= conv_squeeze.bias[None, :])
    w2t    : [C, S]   (= PyTorch conv_excite.weight[:, :, 0, 0])
    b2     : [C, 1]   (= conv_excite.bias[:, None])
    donate_input : alias the output onto x's HBM buffer (callers that do not
                   reuse x); saves a B*C*HW output allocation.
    """
    B, C, H, W = x_nchw.shape
    S = w1.shape[1]
    HW = H * W
    x = x_nchw.reshape(B, C, HW)          # contiguous reshape only (free in XLA)
    itemsize = x.dtype.itemsize

    budget = _vmem_budget_bytes()
    weight_bytes = (2 * C * S + S + C) * 4
    reduce_tmp = C * min(HW, _REDUCE_CHUNK) * 12     # f32 chunk + mask temporaries
    # in + out double-buffered + elementwise temp + reduction chunk + headroom
    fused_bytes = 5 * C * HW * itemsize + reduce_tmp + weight_bytes + (2 << 20)

    use_fused = (fused_bytes <= budget) if _force_path is None else (_force_path == "fused")

    # TODO(synk): for small-HW SE stages (7x7 / 14x14) the lane axis is <128 so
    # stores are masked; pack several batch elements per block (or a
    # channels-last [B, HW, C] variant when C >= 128) to regain lane density.

    if use_fused:
        out = pl.pallas_call(
            functools.partial(_se_fused_kernel, hw=HW),
            out_shape=jax.ShapeDtypeStruct((B, C, HW), x.dtype),
            grid_spec=pltpu.PrefetchScalarGridSpec(
                num_scalar_prefetch=0,
                grid=(B,),
                in_specs=[
                    pl.BlockSpec((1, C, HW), lambda b: (b, 0, 0)),
                    pl.BlockSpec((C, S), lambda b: (0, 0)),
                    pl.BlockSpec((1, S), lambda b: (0, 0)),
                    pl.BlockSpec((C, S), lambda b: (0, 0)),
                    pl.BlockSpec((C, 1), lambda b: (0, 0)),
                ],
                out_specs=pl.BlockSpec((1, C, HW), lambda b: (b, 0, 0)),
            ),
            compiler_params=pltpu.CompilerParams(
                dimension_semantics=("parallel",),
                vmem_limit_bytes=budget,
            ),
            cost_estimate=pl.CostEstimate(
                flops=int(B * (3 * C * HW + 4 * C * S)),
                transcendentals=int(B * C),
                bytes_accessed=int(2 * B * C * HW * itemsize + weight_bytes),
            ),
            input_output_aliases=({0: 0} if donate_input else {}),
        )(x, w1, b1, w2t, b2)
        return out.reshape(B, C, H, W)

    # ---------------- Tiled fallback (v7x / huge feature maps) ----------------
    if _force_tile is not None:
        tile = int(_force_tile)
    else:
        per_lane = C * (5 * itemsize + 8)          # dbl-buffered in+out + temps
        tile = (budget - reduce_tmp - weight_bytes - (4 << 20)) // per_lane
    if tile >= HW:
        tile = HW                                   # single tile: full extent is legal
    else:
        tile = max(128, (tile // 128) * 128)        # lane-dense tiles otherwise
    n_t = pl.cdiv(HW, tile)

    # Pass 1: per-batch channel sums, accumulated across HW tiles.
    sums = pl.pallas_call(
        functools.partial(_se_reduce_kernel, hw=HW, tile=tile),
        out_shape=jax.ShapeDtypeStruct((B, C, 1), jnp.float32),
        grid_spec=pltpu.PrefetchScalarGridSpec(
            num_scalar_prefetch=0,
            grid=(B, n_t),
            in_specs=[pl.BlockSpec((1, C, tile), lambda b, t: (b, 0, t))],
            out_specs=pl.BlockSpec((1, C, 1), lambda b, t: (b, 0, 0)),
        ),
        compiler_params=pltpu.CompilerParams(
            dimension_semantics=("parallel", "arbitrary"),
            vmem_limit_bytes=budget,
        ),
        cost_estimate=pl.CostEstimate(
            flops=int(B * C * HW),
            transcendentals=0,
            bytes_accessed=int(B * C * HW * itemsize + B * C * 4),
        ),
    )(x)

    # Pass 2: streaming scale; gate recomputed per tile (tiny), both axes parallel.
    out = pl.pallas_call(
        functools.partial(_se_scale_kernel, inv_hw=1.0 / HW),
        out_shape=jax.ShapeDtypeStruct((B, C, HW), x.dtype),
        grid_spec=pltpu.PrefetchScalarGridSpec(
            num_scalar_prefetch=0,
            grid=(B, n_t),
            in_specs=[
                pl.BlockSpec((1, C, 1), lambda b, t: (b, 0, 0)),
                pl.BlockSpec((1, C, tile), lambda b, t: (b, 0, t)),
                pl.BlockSpec((C, S), lambda b, t: (0, 0)),
                pl.BlockSpec((1, S), lambda b, t: (0, 0)),
                pl.BlockSpec((C, S), lambda b, t: (0, 0)),
                pl.BlockSpec((C, 1), lambda b, t: (0, 0)),
            ],
            out_specs=pl.BlockSpec((1, C, tile), lambda b, t: (b, 0, t)),
        ),
        compiler_params=pltpu.CompilerParams(
            dimension_semantics=("parallel", "parallel"),
            vmem_limit_bytes=budget,
        ),
        cost_estimate=pl.CostEstimate(
            flops=int(2 * B * C * HW + 4 * B * n_t * C * S),
            transcendentals=int(B * n_t * C),
            bytes_accessed=int(2 * B * C * HW * itemsize + B * C * 4 + weight_bytes),
        ),
        input_output_aliases=({1: 0} if donate_input else {}),
    )(sums, x, w1, b1, w2t, b2)
    return out.reshape(B, C, H, W)


def _reference(x_nchw, w1, b1, w2t, b2):
    """Pure-JAX reference mirroring the PyTorch forward."""
    v = jnp.mean(x_nchw, axis=(2, 3))                       # (B, C)
    h = jnp.maximum(v @ w1 + b1, 0.0)                       # (B, S)
    g = jax.nn.sigmoid(h @ w2t.T + b2[:, 0][None, :])       # (B, C)
    return x_nchw * g[:, :, None, None]


if __name__ == "__main__":
    B, C, H, W = 2, 4, 16, 16
    squeeze_ratio = 0.25
    S = max(2, round(C * squeeze_ratio))   # matches the PyTorch __init__ logic -> 2

    key = jax.random.PRNGKey(0)
    kx, k1, kb1, k2, kb2 = jax.random.split(key, 5)

    x = jax.random.normal(kx, (B, C, H, W), dtype=jnp.float32)
    # conv_squeeze: PyTorch weight (S, C, 1, 1) -> stored here as (C, S); bias (1, S)
    w1 = jax.random.normal(k1, (C, S), dtype=jnp.float32) * 0.5
    b1 = jax.random.normal(kb1, (1, S), dtype=jnp.float32) * 0.1
    # conv_excite: PyTorch weight (C, S, 1, 1) -> stored here as (C, S); bias (C, 1)
    w2t = jax.random.normal(k2, (C, S), dtype=jnp.float32) * 0.5
    b2 = jax.random.normal(kb2, (C, 1), dtype=jnp.float32) * 0.1

    ref = _reference(x, w1, b1, w2t, b2)

    # Default (fused) path.
    out = squeeze_and_excite(x, w1, b1, w2t, b2)
    jax.block_until_ready(out)
    assert out.shape == (B, C, H, W)
    assert jnp.allclose(out, ref, atol=1e-5, rtol=1e-5)

    # Exercise the tiled split path (v7x / big-feature-map fallback): multi-tile
    # accumulation across HW tiles.
    out_split = squeeze_and_excite(x, w1, b1, w2t, b2,
                                   _force_path="split", _force_tile=128)
    jax.block_until_ready(out_split)
    assert jnp.allclose(out_split, ref, atol=1e-5, rtol=1e-5)

    # Split path with a partial (masked) boundary tile: HW = 200, tile = 128.
    x2 = jax.random.normal(kx, (B, C, 10, 20), dtype=jnp.float32)
    ref2 = _reference(x2, w1, b1, w2t, b2)
    out2 = squeeze_and_excite(x2, w1, b1, w2t, b2,
                              _force_path="split", _force_tile=128)
    jax.block_until_ready(out2)
    assert jnp.allclose(out2, ref2, atol=1e-5, rtol=1e-5)

    print("KERNEL_OK")
</pallas_src>

<mosaic_0001>
module attributes {stable_mosaic.version = 11 : i64} {
  func.func @_se_fused_kernel(%arg0: i32, %arg1: memref<1x4x256xf32, #tpu.memory_space<vmem>>, %arg2: memref<4x2xf32, #tpu.memory_space<vmem>>, %arg3: memref<1x2xf32, #tpu.memory_space<vmem>>, %arg4: memref<4x2xf32, #tpu.memory_space<vmem>>, %arg5: memref<4x1xf32, #tpu.memory_space<vmem>>, %arg6: memref<1x4x256xf32, #tpu.memory_space<vmem>>) attributes {dimension_semantics = [#tpu.dimension_semantics<parallel>], iteration_bounds = array<i64: 2>, scalar_prefetch = 0 : i64, scratch_operands = 0 : i64, tpu.core_type = #tpu.core_type<tc>, window_params = [{transform_indices = @transform_0, window_bounds = array<i64: 1, 4, 256>}, {pipeline_mode = #tpu.pipeline_mode<synchronous>, transform_indices = @transform_1, window_bounds = array<i64: 4, 2>}, {pipeline_mode = #tpu.pipeline_mode<synchronous>, transform_indices = @transform_2, window_bounds = array<i64: 1, 2>}, {pipeline_mode = #tpu.pipeline_mode<synchronous>, transform_indices = @transform_3, window_bounds = array<i64: 4, 2>}, {pipeline_mode = #tpu.pipeline_mode<synchronous>, transform_indices = @transform_4, window_bounds = array<i64: 4, 1>}, {transform_indices = @transform_5, window_bounds = array<i64: 1, 4, 256>}]} {
    %c0 = arith.constant 0 : index
    %c0_0 = arith.constant 0 : index
    %c0_1 = arith.constant 0 : index
    %0 = vector.load %arg1[%c0, %c0_0, %c0_1] : memref<1x4x256xf32, #tpu.memory_space<vmem>>, vector<1x4x256xf32>
    %1 = vector.shape_cast %0 : vector<1x4x256xf32> to vector<4x256xf32>
    %cst = arith.constant dense<0.000000e+00> : vector<4xf32>
    %2 = vector.multi_reduction <add>, %1, %cst [1] : vector<4x256xf32> to vector<4xf32>
    %3 = vector.shape_cast %2 : vector<4xf32> to vector<4x1xf32>
    %cst_2 = arith.constant 3.906250e-03 : f32
    %4 = vector.broadcast %cst_2 : f32 to vector<4x1xf32>
    %5 = arith.mulf %3, %4 : vector<4x1xf32>
    %c0_3 = arith.constant 0 : index
    %c0_4 = arith.constant 0 : index
    %6 = vector.load %arg2[%c0_3, %c0_4] : memref<4x2xf32, #tpu.memory_space<vmem>>, vector<4x2xf32>
    %7 = vector.broadcast %5 : vector<4x1xf32> to vector<4x2xf32>
    %8 = arith.mulf %7, %6 : vector<4x2xf32>
    %cst_5 = arith.constant dense<0.000000e+00> : vector<2xf32>
    %9 = vector.multi_reduction <add>, %8, %cst_5 [0] : vector<4x2xf32> to vector<2xf32>
    %10 = vector.shape_cast %9 : vector<2xf32> to vector<1x2xf32>
    %c0_6 = arith.constant 0 : index
    %c0_7 = arith.constant 0 : index
    %11 = vector.load %arg3[%c0_6, %c0_7] : memref<1x2xf32, #tpu.memory_space<vmem>>, vector<1x2xf32>
    %12 = arith.addf %10, %11 : vector<1x2xf32>
    %cst_8 = arith.constant 0.000000e+00 : f32
    %13 = vector.broadcast %cst_8 : f32 to vector<1x2xf32>
    %14 = arith.maximumf %12, %13 : vector<1x2xf32>
    %c0_9 = arith.constant 0 : index
    %c0_10 = arith.constant 0 : index
    %15 = vector.load %arg4[%c0_9, %c0_10] : memref<4x2xf32, #tpu.memory_space<vmem>>, vector<4x2xf32>
    %16 = vector.broadcast %14 : vector<1x2xf32> to vector<4x2xf32>
    %17 = arith.mulf %15, %16 : vector<4x2xf32>
    %cst_11 = arith.constant dense<0.000000e+00> : vector<4xf32>
    %18 = vector.multi_reduction <add>, %17, %cst_11 [1] : vector<4x2xf32> to vector<4xf32>
    %19 = vector.shape_cast %18 : vector<4xf32> to vector<4x1xf32>
    %c0_12 = arith.constant 0 : index
    %c0_13 = arith.constant 0 : index
    %20 = vector.load %arg5[%c0_12, %c0_13] : memref<4x1xf32, #tpu.memory_space<vmem>>, vector<4x1xf32>
    %21 = arith.addf %19, %20 : vector<4x1xf32>
    %22 = arith.negf %21 : vector<4x1xf32>
    %23 = math.exp %22 : vector<4x1xf32>
    %cst_14 = arith.constant 1.000000e+00 : f32
    %24 = vector.broadcast %cst_14 : f32 to vector<4x1xf32>
    %25 = arith.addf %24, %23 : vector<4x1xf32>
    %26 = arith.divf %24, %25 : vector<4x1xf32>
    %c0_15 = arith.constant 0 : index
    %c0_16 = arith.constant 0 : index
    %c0_17 = arith.constant 0 : index
    %27 = vector.load %arg1[%c0_15, %c0_16, %c0_17] : memref<1x4x256xf32, #tpu.memory_space<vmem>>, vector<1x4x256xf32>
    %28 = vector.shape_cast %27 : vector<1x4x256xf32> to vector<4x256xf32>
    %29 = vector.broadcast %26 : vector<4x1xf32> to vector<4x256xf32>
    %30 = arith.mulf %28, %29 : vector<4x256xf32>
    %c0_18 = arith.constant 0 : index
    %c0_19 = arith.constant 0 : index
    %c0_20 = arith.constant 0 : index
    %31 = vector.load %arg6[%c0_18, %c0_19, %c0_20] : memref<1x4x256xf32, #tpu.memory_space<vmem>>, vector<1x4x256xf32>
    %32 = vector.shape_cast %31 : vector<1x4x256xf32> to vector<4x256xf32>
    %33 = vector.shape_cast %30 : vector<4x256xf32> to vector<1x4x256xf32>
    tpu.vector_store %arg6[%c0_18, %c0_19, %c0_20], %33 {strides = array<i32>} : memref<1x4x256xf32, #tpu.memory_space<vmem>>, vector<1x4x256xf32>,
    return
  }
  func.func @transform_0(%arg0: i32) -> (i32, i32, i32) {
    %c0_i32 = arith.constant 0 : i32
    %c0_i32_0 = arith.constant 0 : i32
    %c0_i32_1 = arith.constant 0 : i32
    return %arg0, %c0_i32, %c0_i32_0 : i32, i32, i32
  }
  func.func @transform_1(%arg0: i32) -> (i32, i32) {
    %c0_i32 = arith.constant 0 : i32
    %c0_i32_0 = arith.constant 0 : i32
    %c0_i32_1 = arith.constant 0 : i32
    return %c0_i32, %c0_i32_0 : i32, i32
  }
  func.func @transform_2(%arg0: i32) -> (i32, i32) {
    %c0_i32 = arith.constant 0 : i32
    %c0_i32_0 = arith.constant 0 : i32
    %c0_i32_1 = arith.constant 0 : i32
    return %c0_i32, %c0_i32_0 : i32, i32
  }
  func.func @transform_3(%arg0: i32) -> (i32, i32) {
    %c0_i32 = arith.constant 0 : i32
    %c0_i32_0 = arith.constant 0 : i32
    %c0_i32_1 = arith.constant 0 : i32
    return %c0_i32, %c0_i32_0 : i32, i32
  }
  func.func @transform_4(%arg0: i32) -> (i32, i32) {
    %c0_i32 = arith.constant 0 : i32
    %c0_i32_0 = arith.constant 0 : i32
    %c0_i32_1 = arith.constant 0 : i32
    return %c0_i32, %c0_i32_0 : i32, i32
  }
  func.func @transform_5(%arg0: i32) -> (i32, i32, i32) {
    %c0_i32 = arith.constant 0 : i32
    %c0_i32_0 = arith.constant 0 : i32
    %c0_i32_1 = arith.constant 0 : i32
    return %arg0, %c0_i32, %c0_i32_0 : i32, i32, i32
  }
}

</mosaic_0001>

<bundles_post_ra>
// kernel: tpu_custom_call.1
= control target key start
LH: loop header
LB: loop body
LE: loop exit
PB: predicated region body
PF: predicated region fallthrough
CT: control target
= control target key end

     0   :  { %10 = vsyncpa [#allocation3], 0  ;;  %s1136_s0 = inlined_call_operand.hbm [shape: f32[2,4,256], index: 0, kind: input, shape index: {}]   ;;  %s1137_s1 = inlined_call_operand.hbm [shape: f32[4,2], index: 1, kind: input, shape index: {}]   ;;  %s1138_s2 = inlined_call_operand.hbm [shape: f32[1,2], index: 2, kind: input, shape index: {}]   ;;  %s1139_s3 = inlined_call_operand.hbm [shape: f32[4,2], index: 3, kind: input, shape index: {}]   ;;  %s1140_s4 = inlined_call_operand.hbm [shape: f32[4,1], index: 4, kind: input, shape index: {}]   ;;  %s1141_s5 = inlined_call_operand.hbm [shape: f32[2,4,256], index: 5, kind: output, shape index: {}]  }
   0x1   :  { %12 = vsyncpa [#allocation3 + $0x1], 0 }
   0x2   :  { %13 = vsyncpa [#allocation6], 0 }
   0x3   :  { %14 = vsyncpa [#allocation9], 0 }
   0x4   :  { %15 = vsyncpa [#allocation4], 0 }
   0x5   :  { %17 = vsyncpa [#allocation4 + $0x1], 0  ;;  %s846_s18 = smov 0   ;;  %s848_s19 = smov 0  }
   0x6   :  { %s850_s20 = smov 0   ;;  %s852_s21 = smov 0  }
   0x7 LB: > { %s808_s22 = smov [#allocation5]   ;;  %s867_s24 = sadd.s32 4294967295, %s806_s21   ;;  %s806_s21 = sphi %s852_s21, %s1165_s21   ;;  %s802_s20 = sphi %s850_s20, %s1164_s20   ;;  %s798_s19 = sphi %s848_s19, %s1163_s19   ;;  %s794_s18 = sphi %s846_s18, %s1162_s18  }
   0x8   : > { %s177_s23 = sshll.u32 %s808_s22, 4  ;;  %p470_p0 = scmp.ge.s32.totalorder %s806_s21, 1  ;;  %s872_s23 = int_to_ptr.vmem [resolvable:$true] %s177_s23 }
   0x9   : > { %p1142_p1 = scmp.eq.s32.totalorder %s867_s24, 0  ;;  %p164_p2 = scmp.lt.s32.totalorder %s806_s21, 3 }
   0xa   : > { %s809_s26 = smov [#allocation8]   ;;  %s810_s28 = smov [#allocation7]  }
   0xb   : > { %p874_p3 = pnand %p470_p0, %p164_p2  ;;  %s199_s27 = sshll.u32 %s809_s26, 4  ;;  %s881_s27 = int_to_ptr.vmem [resolvable:$true] %s199_s27 }
   0xc   : > { %s188_s29 = sshll.u32 %s810_s28, 4  ;;  %s811_s6 = smov [#allocation10]   ;;  %s889_s29 = int_to_ptr.vmem [resolvable:$true] %s188_s29 }
   0xd   : > { %s1145_s25 = scalar_select %p874_p3, 1, 0 }
   0xe   : > { %p514_p5 = pneg %p874_p3  ;;  %s891_s7 = sshll.u32 %s811_s6, 4  ;;  %s211_s7 = int_to_ptr.vmem [resolvable:$true] %s891_s7 }
   0xf   : > { %s590_s10 = scalar_lea.hbm %s1137_s1, 64 }
  0x10   : > { %p885_p6 = pnand %p514_p5, %p1142_p1  ;;  %p591_p7 = scmp.ne.s32.totalorder %s1137_s1, %s590_s10 }
  0x11   : > { %p597_p11 = scmp.lt.u32.totalorder %s590_s10, %s1137_s1 }
  0x12   : > { %p901_p8 = pneg %p885_p6 }
  0x14   : > { %p593_p9 = pnand %p901_p8, %p591_p7 }
  0x16   : > { %p594_p10 = pneg %p593_p9 }
  0x18   : > { %p599_p12 = pnand %p597_p11, %p594_p10 }
  0x1a   : > { %602 = shalt.err (!%p599_p12)
}
  0x1b   : > { %s603_s16 = scalar_lea.vmem %s872_s23, 64  ;;  %p611_p5 = scmp.lt.s32.totalorder %s872_s23, %s872_s23 }
  0x1c   : > { %p604_p13 = scmp.ne.s32.totalorder %s872_s23, %s603_s16  ;;  %p612_p4 = scmp.lt.s32.totalorder %s603_s16, %s603_s16 }
  0x1e   : > { %p606_p0 = pnand %p604_p13, %p901_p8  ;;  %p613_p7 = por %p612_p4, %p611_p5 }
  0x20   : > { %p607_p2 = pneg %p606_p0 }
  0x22   : > { %p614_p9 = pnand %p613_p7, %p607_p2 }
  0x24   : > { %617 = shalt.err (!%p614_p9)
}
  0x25   : > { %517 = dma.hbm_to_vmem [thread:$0]  (!%p885_p6), %s1137_s1, 64, %s872_s23, [#allocation6]  }
  0x26   : > { %s618_s6 = scalar_lea.hbm %s1139_s3, 64 }
  0x27   : > { %p619_p10 = scmp.ne.s32.totalorder %s1139_s3, %s618_s6  ;;  %p625_p12 = scmp.lt.u32.totalorder %s618_s6, %s1139_s3 }
  0x29   : > { %p621_p4 = pnand %p619_p10, %p901_p8 }
  0x2b   : > { %p622_p11 = pneg %p621_p4 }
  0x2d   : > { %p627_p13 = pnand %p625_p12, %p622_p11 }
  0x2f   : > { %630 = shalt.err (!%p627_p13)
}
  0x30   : > { %s631_s23 = scalar_lea.vmem %s881_s27, 64  ;;  %p639_p7 = scmp.lt.s32.totalorder %s881_s27, %s881_s27 }
  0x31   : > { %p632_p0 = scmp.ne.s32.totalorder %s881_s27, %s631_s23  ;;  %p640_p9 = scmp.lt.s32.totalorder %s631_s23, %s631_s23 }
  0x33   : > { %p634_p2 = pnand %p632_p0, %p901_p8  ;;  %p641_p10 = por %p640_p9, %p639_p7 }
  0x35   : > { %p635_p5 = pneg %p634_p2 }
  0x37   : > { %p642_p4 = pnand %p641_p10, %p635_p5 }
  0x39   : > { %645 = shalt.err (!%p642_p4)
}
  0x3a   : > { %523 = dma.hbm_to_vmem [thread:$0]  (!%p885_p6), %s1139_s3, 64, %s881_s27, [#allocation9]  }
  0x3b   : > { %s646_s17 = scalar_lea.hbm %s1138_s2, 16 }
  0x3c   : > { %p647_p11 = scmp.ne.s32.totalorder %s1138_s2, %s646_s17  ;;  %p653_p0 = scmp.lt.u32.totalorder %s646_s17, %s1138_s2 }
  0x3e   : > { %p649_p12 = pnand %p647_p11, %p901_p8 }
  0x40   : > { %p650_p13 = pneg %p649_p12 }
  0x42   : > { %p655_p2 = pnand %p653_p0, %p650_p13 }
  0x44   : > { %658 = shalt.err (!%p655_p2)
}
  0x45   : > { %s659_s27 = scalar_lea.vmem %s889_s29, 16  ;;  %s666_s8 = scalar_lea.vmem %s889_s29, 32 }
  0x46   : > { %p660_p5 = scmp.ne.s32.totalorder %s889_s29, %s659_s27  ;;  %p667_p10 = scmp.lt.s32.totalorder %s889_s29, %s889_s29 }
  0x47   : > { %p668_p4 = scmp.lt.s32.totalorder %s666_s8, %s659_s27 }
  0x48   : > { %p662_p7 = pnand %p660_p5, %p901_p8 }
  0x49   : > { %p669_p11 = por %p668_p4, %p667_p10 }
  0x4a   : > { %p663_p9 = pneg %p662_p7 }
  0x4c   : > { %p670_p12 = pnand %p669_p11, %p663_p9 }
  0x4e   : > { %673 = shalt.err (!%p670_p12)
}
  0x4f   : > { %520 = dma.hbm_to_vmem [thread:$0]  (!%p885_p6), %s1138_s2, 16, %s889_s29, [#allocation6]  }
  0x50   : > { %s674_s12 = scalar_lea.hbm %s1140_s4, 64 }
  0x51   : > { %p675_p13 = scmp.ne.s32.totalorder %s1140_s4, %s674_s12  ;;  %p681_p5 = scmp.lt.u32.totalorder %s674_s12, %s1140_s4 }
  0x53   : > { %p677_p0 = pnand %p675_p13, %p901_p8 }
  0x55   : > { %p678_p2 = pneg %p677_p0 }
  0x57   : > { %p683_p7 = pnand %p681_p5, %p678_p2 }
  0x59   : > { %686 = shalt.err (!%p683_p7)
}
  0x5a   : > { %s687_s22 = scalar_lea.vmem %s211_s7, 64  ;;  %p695_p11 = scmp.lt.s32.totalorder %s211_s7, %s211_s7 }
  0x5b   : > { %p688_p9 = scmp.ne.s32.totalorder %s211_s7, %s687_s22  ;;  %p696_p12 = scmp.lt.s32.totalorder %s687_s22, %s687_s22 }
  0x5d   : > { %p690_p10 = pnand %p688_p9, %p901_p8  ;;  %p697_p1 = por %p696_p12, %p695_p11 }
  0x5f   : > { %p691_p4 = pneg %p690_p10 }
  0x61   : > { %p698_p3 = pnand %p697_p1, %p691_p4 }
  0x63   : > { %701 = shalt.err (!%p698_p3)
}
  0x64   : > { %526 = dma.hbm_to_vmem [thread:$0]  (!%p885_p6), %s1140_s4, 64, %s211_s7, [#allocation9]  }
  0x65   : > { %s469_s13 = sadd.s32 4294967294, %s806_s21   ;;  %s990_s30 = sadd.s32 1, %s806_s21  }
  0x66   : > { %s27_s28 = ssub.s32 %s806_s21, %s990_s30  ;;  %s30_s6 = sadd.s32 1, %s802_s20 }
  0x67   : > { %p28_p1 = scmp.eq.s32.totalorder %s27_s28, 0  ;;  %p37_p3 = scmp.ne.s32.totalorder %s802_s20, %s798_s19 }
  0x68   : > { %p38_p8 = scmp.eq.s32.totalorder %s806_s21, 0  ;;  %p43_p13 = scmp.ne.s32.totalorder %s798_s19, %s794_s18 }
  0x69   : > { %s1001_s27 = scalar_select %p28_p1, %s802_s20, %s30_s6  }
  0x6a   : > { %p1003_p0 = por %p38_p8, %p37_p3  ;;  %p1149_p2 = scmp.eq.s32.totalorder %s867_s24, 0 }
  0x6b   : > { %p151_p5 = scmp.eq.s32.totalorder %s867_s24, 1  ;;  %p157_p7 = scmp.eq.s32.totalorder %s469_s13, 1 }
  0x6c   : > { %p1009_p6 = por %p1149_p2, %p43_p13  ;;  %p539_p9 = scmp.lt.s32.totalorder %s806_s21, 2 }
  0x6d   : > { %s221_s9 = sand.u32 1, %s802_s20   ;;  %p1016_p10 = por %p151_p5, %p37_p3 }
  0x6e   : > { %p1020_p4 = por %p157_p7, %p43_p13  ;;  %s476_s23 = sshll.u32 %s221_s9, 3 }
  0x6f   : > { %s1151_s10 = scalar_select %p1016_p10, 1, 0 }
  0x70   : > { %s1152_s11 = scalar_select %p1020_p4, 1, 0 }
  0x71   : > { %s492_s12 = sshll.u32 %s806_s21, 7  ;;  %s225_s17 = scalar_lea.vmem [#allocation2], %s476_s23 }
  0x72   : > { %s1028_s16 = scalar_lea.hbm %s1136_s0, %s492_s12  ;;  %s233_s22 = sshll.u32 %s225_s17, 4  ;;  %s1030_s22 = int_to_ptr.vmem [resolvable:$true] %s233_s22 }
  0x73   : > { %p1034_p11 = pnand %p539_p9, %p1003_p0  ;;  %s222_s26 = scalar_lea.sflag [#allocation3], %s221_s9 }
  0x74   : > { %s702_s13 = scalar_lea.hbm %s1028_s16, 128  ;;  %s707_s23 = scalar_lea.hbm %s1136_s0, 256 }
  0x75   : > { %p703_p12 = scmp.ne.s32.totalorder %s1028_s16, %s702_s13  ;;  %p704_p1 = pneg %p1034_p11 }
  0x76   : > { %p708_p13 = scmp.lt.u32.totalorder %s1028_s16, %s1136_s0  ;;  %p709_p0 = scmp.lt.u32.totalorder %s707_s23, %s702_s13 }
  0x77   : > { %p705_p3 = pnand %p704_p1, %p703_p12  ;;  %p711_p5 = scmp.lt.u32.totalorder %s702_s13, %s1028_s16 }
  0x78   : > { %p710_p2 = por %p709_p0, %p708_p13 }
  0x79   : > { %p706_p8 = pneg %p705_p3 }
  0x7a   : > { %p712_p7 = por %p711_p5, %p710_p2 }
  0x7c   : > { %p713_p9 = pnand %p712_p7, %p706_p8 }
  0x7e   : > { %716 = shalt.err (!%p713_p9)
}
  0x7f   : > { %s717_s9 = scalar_lea.vmem %s1030_s22, 128  ;;  %s812_s14 = smov [#allocation2]  }
  0x80   : > { %p718_p12 = scmp.ne.s32.totalorder %s1030_s22, %s717_s9  ;;  %s722_s15 = sshll.u32 %s812_s14, 4  ;;  %s723_s15 = int_to_ptr.vmem [resolvable:$false] %s722_s15 }
  0x81   : > { %s724_s17 = scalar_lea.vmem %s723_s15, 256  ;;  %p725_p10 = scmp.lt.s32.totalorder %s1030_s22, %s723_s15 }
  0x82   : > { %p720_p3 = pnand %p718_p12, %p704_p1  ;;  %p726_p13 = scmp.lt.s32.totalorder %s724_s17, %s717_s9 }
  0x84   : > { %p721_p4 = pneg %p720_p3  ;;  %p727_p0 = por %p726_p13, %p725_p10 }
  0x86   : > { %p728_p2 = pnand %p727_p0, %p721_p4 }
  0x88   : > { %731 = shalt.err (!%p728_p2)
}
  0x89   : > { %530 = dma.hbm_to_vmem [thread:$0]  (!%p1034_p11), %s1028_s16, 128, %s1030_s22, %s222_s26  }
  0x8a   : > { %p1154_p8 = scmp.ne.s32.totalorder %s1145_s25, 0 }
  0x8b   : > { %s1066_s13 = sand.u32 (!%p1154_p8), 1, %s798_s19  }
  0x8c   : > { %242 = sbr.rel (%p1154_p8) target bundleno = 645 (0x285), region = 40  ;;  %s480_s28 = sshll.u32 (!%p1154_p8), %s1066_s13, 3 }
  0x8d   : > { %s245_s6 = scalar_lea.sflag (!%p1154_p8), [#allocation3], %s1066_s13  ;;  %s248_s23 = scalar_lea.vmem (!%p1154_p8), [#allocation2], %s480_s28 }
  0x93   : > { %777 = dma.done.wait (%p1009_p6), %s245_s6, 128  }
  0x94   : > { %779 = vsyncadd (%p1009_p6), %s245_s6, 4294967168  ;;  %p1155_p10 = scmp.eq.s32.totalorder %s867_s24, 0 }
  0x96   : > { %781 = dma.done.wait (%p1155_p10), [#allocation6], 80   ;;  %p1156_p4 = pmov %p1155_p10 }
  0x98   : > { %783 = vsyncadd (%p1156_p4), [#allocation6], 4294967216  ;;  %p1157_p11 = pmov %p1156_p4 }
  0x99   : > { %p1158_p1 = pmov %p1156_p4 }
  0x9a   : > { %785 = dma.done.wait (%p1157_p11), [#allocation9], 128  }
  0x9b   : > { %787 = vsyncadd (%p1158_p1), [#allocation9], 4294967168  ;;  %vm295_vm0 = vcmask 1043456   ;;  %v291_v0 = vld [vmem:[%s248_s23] sm:$0xff]  ;;  %v302_v5 = vld [vmem:[#allocation5] sm:$0xf]  ;;  %v316_v13 = vlaneseq }
  0x9c   : > { %v293_v1 = vcombine.high %v291_v0, %v291_v0  ;;  %v296_v2 = vsel %vm295_vm0, %v291_v0, 0.0  ;;  %vm304_vm1 = vcmask 11264   ;;  %v312_v17 = vld [vmem:[#allocation7] sm:$0x1]  ;;  %v315_v22 = vld [vmem:[#allocation8] sm:$0xf] }
  0x9d   : > { %v317_v16 = vshrl.u32 %v316_v13, 7  ;;  %v813_v26 = vmov 0   ;;  %v324_v27 = vld [vmem:[#allocation10] sm:$0xf]  ;;  %v814_v34 = vmov 839922192  }
  0x9e   : > { %v297_v3 = vsel %vm295_vm0, %v293_v1, 0.0  ;;  %583 = vset.pattern.permute.xlu1 %v813_v26  ;;  %584 = vset.pattern.permute.xlu0 %v813_v26  ;;  %v337_v35 = vunpack.c.l.s4 %v814_v34  ;;  %s493_s25 = sshll.u32 %s867_s24, 7  ;;  %s290_s7 = scalar_lea.vmem [#allocation11], %s480_s28 }
  0x9f   : > { %v298_v4 = vadd.f32 %v297_v3, %v296_v2  ;;  %v318_v20 = vsub.s32 0, %v317_v16  ;;  %s361_s16 = sshll.u32 %s290_s7, 4  ;;  %s1092_s26 = scalar_lea.hbm %s1141_s5, %s493_s25  ;;  %s1094_s16 = int_to_ptr.vmem [resolvable:$true] %s361_s16 }
  0xa0   : > { %v338_v36 = vunpack.c.0.s8 %v337_v35  ;;  %s347_s8 = scalar_lea.sflag [#allocation4], %s1066_s13  ;;  %s732_s12 = scalar_lea.vmem %s1094_s16, 128 }
  0xa1   : > { %299 = vadd.xlane.f32.xlu0 %v298_v4  ;;  %p733_p6 = scmp.ne.s32.totalorder %s1094_s16, %s732_s12  ;;  %p1159_p5 = scmp.ne.s32.totalorder %s1151_s10, 0 }
  0xa2   : > { %v341_v37 = vsub.s32 %v338_v36, %v317_v16  ;;  %s815_s24 = smov [#allocation11]  }
  0xa3   : > { %p734_p7 = pnand %p733_p6, %p1159_p5  ;;  %s736_s9 = sshll.u32 %s815_s24, 4  ;;  %s737_s9 = int_to_ptr.vmem [resolvable:$false] %s736_s9 }
  0xa4   : > { %s738_s14 = scalar_lea.vmem %s737_s9, 256  ;;  %p739_p12 = scmp.lt.s32.totalorder %s1094_s16, %s737_s9 }
  0xa5   : > { %p735_p9 = pneg %p734_p7  ;;  %p740_p3 = scmp.lt.s32.totalorder %s738_s14, %s732_s12 }
  0xa7   : > { %p741_p13 = por %p740_p3, %p739_p12 }
  0xa9   : > { %p742_p0 = pnand %p741_p13, %p735_p9 }
 0x12e   : > { %v300_v6 = vpop.xlane.xlu0 %299 }
 0x12f   : > { %v301_v7 = vmul.f32 0.00390625, %v300_v6 }
 0x131   : > { %v303_v8 = vmul.f32 %v302_v5, %v301_v7 }
 0x133   : > { %v305_v9 = vsel %vm304_vm1, %v303_v8, 0.0 }
 0x134   : > { %v306_v10 = vrot.slane %v305_v9, 4 }
 0x136   : > { %v307_v11 = vadd.f32 %v306_v10, %v305_v9 }
 0x138   : > { %v308_v12 = vrot.slane %v307_v11, 2 }
 0x13a   : > { %v309_v14 = vadd.f32 %v308_v12, %v307_v11 }
 0x13c   : > { %v310_v15 = vrot.slane %v309_v14, 1 }
 0x13e   : > { %v311_v18 = vadd.f32 %v310_v15, %v309_v14 }
 0x140   : > { %v313_v19 = vadd.f32 %v312_v17, %v311_v18 }
 0x142   : > { %v314_v21 = vmax.f32 %v313_v19, 0.0 }
 0x144   : > { %v319_v23 = vrot.slane %v314_v21, %v318_v20 }
 0x146   : > { %v320_v24 = vmul.f32 %v319_v23, %v315_v22 }
 0x148   : > { %v321_v25 = vsel %vm304_vm1, %v320_v24, 0.0 }
 0x149   : > { %322 = vadd.xlane.f32.xlu0 %v321_v25 }
 0x1d6   : > { %v323_v28 = vpop.xlane.xlu0 %322 }
 0x1d7   : > { %v325_v29 = vadd.f32 %v324_v27, %v323_v28 }
 0x1d9   : > { %v486_v30 = vmul.f32 -1.442695, %v325_v29 }
 0x1db   : > { %586 = vpow2.f32 %v486_v30 }
 0x1e5   : > { %v587_v31 = vpop.eup %586 }
 0x1e6   : > { %v329_v32 = vadd.f32 1.0, %v587_v31 }
 0x1e8   : > { %588 = vrcp.f32 %v329_v32 }
 0x1f2   : > { %v589_v33 = vpop.eup %588 }
 0x1f3   : > { %334 = vperm.xlu1 %583, %v589_v33  }
 0x272   : > { %v335_v38 = vpop.permute.xlu1 %334 }
 0x273   : > { %v342_v39 = vrot.slane %v335_v38, %v341_v37 }
 0x275   : > { %v344_v40 = vmul.f32 %v342_v39, %v291_v0 }
 0x277   : > { %345 = vst [vmem:[%s290_s7] sm:$0xff] %v344_v40 }
 0x278   : > { %745 = shalt.err (!%p742_p0)
}
 0x279   : > { %s746_s15 = scalar_lea.hbm %s1092_s26, 128  ;;  %s750_s28 = scalar_lea.hbm %s1141_s5, 256 }
 0x27a   : > { %p747_p2 = scmp.ne.s32.totalorder %s1092_s26, %s746_s15  ;;  %p751_p4 = scmp.lt.u32.totalorder %s1092_s26, %s1141_s5 }
 0x27b   : > { %p752_p11 = scmp.lt.u32.totalorder %s750_s28, %s746_s15  ;;  %p754_p6 = scmp.lt.u32.totalorder %s746_s15, %s1092_s26 }
 0x27c   : > { %p748_p8 = pnand %p747_p2, %p1159_p5 }
 0x27d   : > { %p753_p1 = por %p752_p11, %p751_p4 }
 0x27e   : > { %p749_p10 = pneg %p748_p8 }
 0x27f   : > { %p755_p7 = por %p754_p6, %p753_p1 }
 0x281   : > { %p756_p9 = pnand %p755_p7, %p749_p10 }
 0x283   : > { %759 = shalt.err (!%p756_p9)
}
 0x284   : > { %512 = dma.vmem_to_hbm [thread:$0]  (%p1159_p5), %s1094_s16, 128, %s1092_s26, %s347_s8  }
 0x285 PF: > { %s373_s25 = sand.u32 1, %s794_s18   ;;  %p1160_p12 = scmp.ne.s32.totalorder %s1152_s11, 0 }
 0x286   : > { %p1161_p3 = scmp.ge.s32.totalorder %s806_s21, 2  ;;  %s374_s7 = scalar_lea.sflag [#allocation4], %s373_s25 }
 0x288   : > { %p532_p13 = pnand %p1161_p3, %p1160_p12 }
 0x28a   : > { %789 = dma.done.wait (!%p532_p13), %s374_s7, 128  }
 0x28b   : > { %791 = vsyncadd (!%p532_p13), %s374_s7, 4294967168  ;;  %p20_p0 = scmp.ge.s32.totalorder %s990_s30, 4   ;;  %s1162_s18 = smov %s798_s19 }
 0x28c   : > { %s1163_s19 = smov %s802_s20  ;;  %s1164_s20 = smov %s1001_s27 }
 0x28d   : > { %s1165_s21 = smov %s990_s30  ;;  %22 = sbr.rel (!%p20_p0) target bundleno = 7 (0x7), region = 101 }
 0x294   :  { %379 = vsyncpa [#allocation3], 1 }
 0x295   :  { %381 = vsyncpa [#allocation3 + $0x1], 1 }
 0x296   :  { %382 = vsyncpa [#allocation6], 1 }
 0x297   :  { %383 = vsyncpa [#allocation9], 1 }
 0x298   :  { %384 = vsyncpa [#allocation4], 1 }
 0x299   :  { %386 = vsyncpa [#allocation4 + $0x1], 1 }

</bundles_post_ra>
